<compile_context>
chip_gen: v5e
topology: v5e:2x2
jax: 0.10.0
libtpu: 0.0.40
codegen_flags: <defaults>
</compile_context>

<pallas_src>
import functools

import jax
import jax.numpy as jnp
from jax.experimental import pallas as pl
from jax.experimental.pallas import tpu as pltpu

LANE = 128   # lane width of a TPU vreg; feature dims are padded to this
N_PAD = 128  # node axis padded to a full 128 so A / X / out are lane-dense


def gcn_fused_kernel(a_ref, x_ref, w_ref, b_ref, o_ref):
    """Fused 2-layer GraphConv forward, fully resident in VMEM.

    a_ref: (128, 128) bf16 normalized adjacency (zero-padded past N)
    x_ref: (128, 128) bf16 node features (zero-padded past N / F_in)
    w_ref: (128, 256) bf16 [W1 | W2] concatenated along lanes (zero-padded)
    b_ref: (2, 128)   f32  [b1 ; b2] (zero-padded)
    o_ref: (128, 128) f32 output (caller slices to (N, out_size))
    """
    a = a_ref[...]  # bf16, reused by both aggregation matmuls

    w1 = w_ref[:, :LANE]
    w2 = w_ref[:, LANE:]
    b1 = b_ref[0:1, :]
    b2 = b_ref[1:2, :]

    # ---- Layer 0: aggregate-then-transform, (A @ X) @ W1  (F_in < F_hid) ----
    ax = jnp.dot(a, x_ref[...], preferred_element_type=jnp.float32)
    h = jnp.dot(ax.astype(jnp.bfloat16), w1, preferred_element_type=jnp.float32)
    # Bias + ReLU fused in-register (no VMEM scratch round-trip).
    h_act = jnp.maximum(h + b1, 0.0)

    # Dropout(p=0.5) between the layers is identity at inference.
    # TODO(synk): training-mode dropout (scaled Bernoulli mask) not emitted.

    # ---- Layer 1: transform-then-aggregate, A @ (H @ W2)  (F_out < F_hid) ----
    hw = jnp.dot(h_act.astype(jnp.bfloat16), w2, preferred_element_type=jnp.float32)
    out = jnp.dot(a, hw.astype(jnp.bfloat16), preferred_element_type=jnp.float32)
    o_ref[...] = (out + b2).astype(o_ref.dtype)


def prepare_graph(a_norm):
    """Pad A_norm to (N_PAD, N_PAD) and cast to bf16 ONCE (not per call)."""
    n = a_norm.shape[0]
    assert n <= N_PAD, "pad-to-128 node path only"
    a_pad = jnp.zeros((N_PAD, N_PAD), jnp.float32).at[:n, :n].set(a_norm)
    return a_pad.astype(jnp.bfloat16)


def prepare_params(params):
    """Zero-pad + concatenate weights/biases ONCE (not per call).

    Zero padding keeps the math exact: padded weight rows/cols are zero, so
    padded lanes stay zero through bias + ReLU (pad-with-zeros contract).
    """
    in_size, hid_size = params["w1"].shape
    _, out_size = params["w2"].shape
    assert max(in_size, hid_size, out_size) <= LANE, "pad-to-128 feature path only"

    w1 = jnp.pad(params["w1"], ((0, LANE - in_size), (0, LANE - hid_size)))
    w2 = jnp.pad(params["w2"], ((0, LANE - hid_size), (0, LANE - out_size)))
    w_cat = jnp.concatenate([w1, w2], axis=1).astype(jnp.bfloat16)   # (128, 256)

    b1 = jnp.pad(params["b1"], (0, LANE - hid_size))
    b2 = jnp.pad(params["b2"], (0, LANE - out_size))
    b_cat = jnp.stack([b1, b2]).astype(jnp.float32)                  # (2, 128)
    return w_cat, b_cat


@functools.partial(jax.jit, static_argnames=("out_size",))
def gcn_forward(a_pad, features, w_cat, b_cat, *, out_size):
    """Fused forward pass. Returns (N, out_size) float32 logits."""
    n, in_size = features.shape
    # Per-call feature padding (tiny); graph + params were pre-padded/cast.
    x_pad = jnp.zeros((N_PAD, LANE), jnp.bfloat16).at[:n, :in_size].set(
        features.astype(jnp.bfloat16))

    vmem = pl.BlockSpec(memory_space=pltpu.MemorySpace.VMEM)
    out_padded = pl.pallas_call(
        gcn_fused_kernel,
        out_shape=jax.ShapeDtypeStruct((N_PAD, LANE), jnp.float32),
        # Whole arrays resident in VMEM, single invocation (no grid): at this
        # size the workload is launch/DMA-overhead bound, so one fused call.
        in_specs=[vmem] * 4,
        out_specs=vmem,
    )(a_pad, x_pad, w_cat, b_cat)
    return out_padded[:n, :out_size]


def reference_forward(a_norm, features, params):
    """Pure-JAX f32 reference (same math, no padding / bf16)."""
    h = jnp.maximum(a_norm @ (features @ params["w1"]) + params["b1"], 0.0)
    return a_norm @ (h @ params["w2"]) + params["b2"]


def build_normalized_adjacency(key, n):
    """Deterministic small undirected graph with self-loops, 'both' norm."""
    probs = jax.random.uniform(key, (n, n))
    adj = (probs < 0.1).astype(jnp.float32)
    adj = jnp.maximum(adj, adj.T)            # symmetrize (undirected)
    adj = jnp.maximum(adj, jnp.eye(n))       # self-loops -> no zero degrees
    deg = adj.sum(axis=1)
    d_inv_sqrt = 1.0 / jnp.sqrt(deg)
    return adj * d_inv_sqrt[:, None] * d_inv_sqrt[None, :]


def init_params(key, in_size, hid_size, out_size):
    k1, k2 = jax.random.split(key)

    def xavier(k, fan_in, fan_out):
        limit = jnp.sqrt(6.0 / (fan_in + fan_out))
        return jax.random.uniform(k, (fan_in, fan_out), jnp.float32,
                                  minval=-limit, maxval=limit)

    return {
        "w1": xavier(k1, in_size, hid_size),
        "b1": jnp.zeros((hid_size,), jnp.float32),
        "w2": xavier(k2, hid_size, out_size),
        "b2": jnp.zeros((out_size,), jnp.float32),
    }


if __name__ == "__main__":
    N = 64            # number of graph nodes
    IN_SIZE = 16
    HID_SIZE = 32
    OUT_SIZE = 8

    root = jax.random.PRNGKey(0)
    k_graph, k_feat, k_param = jax.random.split(root, 3)

    a_norm = build_normalized_adjacency(k_graph, N)
    features = jax.random.normal(k_feat, (N, IN_SIZE), jnp.float32)
    params = init_params(k_param, IN_SIZE, HID_SIZE, OUT_SIZE)

    # One-time preparation (padding + bf16 cast hoisted off the hot path).
    a_pad = prepare_graph(a_norm)
    w_cat, b_cat = prepare_params(params)

    out = gcn_forward(a_pad, features, w_cat, b_cat, out_size=OUT_SIZE)
    jax.block_until_ready(out)

    assert out.shape == (N, OUT_SIZE), out.shape
    assert jnp.all(jnp.isfinite(out))

    # Numerical check against the pure-JAX f32 reference. bf16 MXU operands
    # (A_norm cast included) lose ~3 decimal digits -> loose-ish tolerance.
    ref = reference_forward(a_norm, features, params)
    assert jnp.allclose(out, ref, atol=1e-1, rtol=1e-1), float(
        jnp.max(jnp.abs(out - ref)))

    print("KERNEL_OK")
</pallas_src>

<mosaic_0001>
module attributes {stable_mosaic.version = 11 : i64} {
  func.func @gcn_fused_kernel(%arg0: memref<128x128xbf16, #tpu.memory_space<vmem>>, %arg1: memref<128x128xbf16, #tpu.memory_space<vmem>>, %arg2: memref<128x256xbf16, #tpu.memory_space<vmem>>, %arg3: memref<2x128xf32, #tpu.memory_space<vmem>>, %arg4: memref<128x128xf32, #tpu.memory_space<vmem>>) attributes {dimension_semantics = [], scalar_prefetch = 0 : i64, scratch_operands = 0 : i64, tpu.core_type = #tpu.core_type<tc>} {
    %c0 = arith.constant 0 : index
    %c0_0 = arith.constant 0 : index
    %0 = vector.load %arg0[%c0, %c0_0] : memref<128x128xbf16, #tpu.memory_space<vmem>>, vector<128x128xbf16>
    %c0_1 = arith.constant 0 : index
    %c0_2 = arith.constant 0 : index
    %1 = vector.load %arg2[%c0_1, %c0_2] : memref<128x256xbf16, #tpu.memory_space<vmem>>, vector<128x128xbf16>
    %c0_3 = arith.constant 0 : index
    %c128 = arith.constant 128 : index
    %2 = vector.load %arg2[%c0_3, %c128] : memref<128x256xbf16, #tpu.memory_space<vmem>>, vector<128x128xbf16>
    %c0_4 = arith.constant 0 : index
    %c0_5 = arith.constant 0 : index
    %3 = vector.load %arg3[%c0_4, %c0_5] : memref<2x128xf32, #tpu.memory_space<vmem>>, vector<1x128xf32>
    %c1 = arith.constant 1 : index
    %c0_6 = arith.constant 0 : index
    %4 = vector.load %arg3[%c1, %c0_6] : memref<2x128xf32, #tpu.memory_space<vmem>>, vector<1x128xf32>
    %c0_7 = arith.constant 0 : index
    %c0_8 = arith.constant 0 : index
    %5 = vector.load %arg1[%c0_7, %c0_8] : memref<128x128xbf16, #tpu.memory_space<vmem>>, vector<128x128xbf16>
    %cst = arith.constant dense<0.000000e+00> : vector<128x128xf32>
    %6 = tpu.matmul %0, %5, %cst {dimension_numbers = #tpu.dot_dimension_numbers<[1], [0], [0], [1], [0, 0, 1, 1], [], []>} : vector<128x128xbf16>, vector<128x128xbf16>, vector<128x128xf32> -> vector<128x128xf32>
    %7 = arith.truncf %6 : vector<128x128xf32> to vector<128x128xbf16>
    %cst_9 = arith.constant dense<0.000000e+00> : vector<128x128xf32>
    %8 = tpu.matmul %7, %1, %cst_9 {dimension_numbers = #tpu.dot_dimension_numbers<[1], [0], [0], [1], [0, 0, 1, 1], [], []>} : vector<128x128xbf16>, vector<128x128xbf16>, vector<128x128xf32> -> vector<128x128xf32>
    %9 = vector.broadcast %3 : vector<1x128xf32> to vector<128x128xf32>
    %10 = arith.addf %8, %9 : vector<128x128xf32>
    %cst_10 = arith.constant 0.000000e+00 : f32
    %11 = vector.broadcast %cst_10 : f32 to vector<128x128xf32>
    %12 = arith.maximumf %10, %11 : vector<128x128xf32>
    %13 = arith.truncf %12 : vector<128x128xf32> to vector<128x128xbf16>
    %cst_11 = arith.constant dense<0.000000e+00> : vector<128x128xf32>
    %14 = tpu.matmul %13, %2, %cst_11 {dimension_numbers = #tpu.dot_dimension_numbers<[1], [0], [0], [1], [0, 0, 1, 1], [], []>} : vector<128x128xbf16>, vector<128x128xbf16>, vector<128x128xf32> -> vector<128x128xf32>
    %15 = arith.truncf %14 : vector<128x128xf32> to vector<128x128xbf16>
    %cst_12 = arith.constant dense<0.000000e+00> : vector<128x128xf32>
    %16 = tpu.matmul %0, %15, %cst_12 {dimension_numbers = #tpu.dot_dimension_numbers<[1], [0], [0], [1], [0, 0, 1, 1], [], []>} : vector<128x128xbf16>, vector<128x128xbf16>, vector<128x128xf32> -> vector<128x128xf32>
    %17 = vector.broadcast %4 : vector<1x128xf32> to vector<128x128xf32>
    %18 = arith.addf %16, %17 : vector<128x128xf32>
    %c0_13 = arith.constant 0 : index
    %c0_14 = arith.constant 0 : index
    %19 = vector.load %arg4[%c0_13, %c0_14] : memref<128x128xf32, #tpu.memory_space<vmem>>, vector<128x128xf32>
    tpu.vector_store %arg4[%c0_13, %c0_14], %18 {strides = array<i32>} : memref<128x128xf32, #tpu.memory_space<vmem>>, vector<128x128xf32>,
    return
  }
}

</mosaic_0001>

<bundles_post_ra>
// kernel: gcn_forward.1
= control target key start
LH: loop header
LB: loop body
LE: loop exit
PB: predicated region body
PF: predicated region fallthrough
CT: control target
= control target key end

     0   :  { %9 = vsyncpa [#allocation3], 0  ;;  %s741_s18 = smov [#allocation2]   ;;  %s742_s20 = smov 64   ;;  %s978_s0 = inlined_call_operand.hbm [shape: bf16[128,128], index: 0, kind: input, shape index: {}]   ;;  %s979_s1 = inlined_call_operand.vmem [shape: bf16[128,128], index: 1, kind: input, shape index: {}]   ;;  %s980_s2 = inlined_call_operand.vmem [shape: bf16[128,256], index: 2, kind: input, shape index: {}]   ;;  %s981_s3 = inlined_call_operand.vmem [shape: f32[2,128], index: 3, kind: input, shape index: {}]   ;;  %s982_s4 = inlined_call_operand.vmem [shape: f32[128,128], index: 4, kind: output, shape index: {}]  }
   0x1   :  { %s14_s17 = sshll.u32 %s978_s0, 4  ;;  %s16_s19 = sshll.u32 %s741_s18, 4  ;;  %s15_s17 = int_to_ptr.hbm [resolvable:$true] %s14_s17  ;;  %s17_s19 = int_to_ptr.vmem [resolvable:$true] %s16_s19 }
   0x2   :  { %s743_s21 = smov 4  }
   0x3   :  { %22 = dma.hbm_to_vmem [thread:$0]  %s15_s17, 1024, %s17_s19, [#allocation3], %s742_s20, %s742_s20, %s743_s21  }
   0x4   :  { %739 = dma.done.wait [#allocation3], 1024  }
   0x5   :  { %740 = vsyncadd [#allocation3], 4294966272  ;;  %v709_v0 = vld [vmem:[%s979_s1 + $0x38] sm:$0xff]  ;;  %v708_v1 = vld [vmem:[%s979_s1 + $0x30] sm:$0xff] }
   0x6   :  { %195 = vmatpush.bf16.msra.mxu0 %v709_v0  ;;  %v707_v2 = vld [vmem:[%s979_s1 + $0x28] sm:$0xff]  ;;  %v706_v3 = vld [vmem:[%s979_s1 + $0x20] sm:$0xff]  ;;  %v705_v4 = vld [vmem:[%s979_s1 + $0x18] sm:$0xff] }
   0x7   :  { %v704_v5 = vld [vmem:[%s979_s1 + $0x10] sm:$0xff]  ;;  %v703_v6 = vld [vmem:[%s979_s1 + $0x8] sm:$0xff]  ;;  %v702_v7 = vld [vmem:[%s979_s1] sm:$0xff] }
   0x8   :  { %v796_v8 = vld [vmem:[#allocation2] sm:$0xff]  ;;  %v799_v9 = vld [vmem:[#allocation2 + $0x8] sm:$0xff]  ;;  %v802_v10 = vld [vmem:[#allocation2 + $0x10] sm:$0xff] }
   0x9   :  { %v805_v11 = vld [vmem:[#allocation2 + $0x18] sm:$0xff]  ;;  %v808_v12 = vld [vmem:[#allocation2 + $0x20] sm:$0xff]  ;;  %v644_v13 = vld [vmem:[%s980_s2 + $0x70] sm:$0xf] }
   0xa   :  { %196 = vmatpush.bf16.msra.mxu0 %v708_v1  ;;  %v693_v14 = vld [vmem:[%s980_s2 + $0x74] sm:$0xf0]  ;;  %v640_v15 = vld [vmem:[%s980_s2 + $0x60] sm:$0xf]  ;;  %v692_v17 = vld [vmem:[%s980_s2 + $0x64] sm:$0xf0] }
   0xb   :  { %v645_v16 = vor.u32 %v693_v14, %v644_v13  ;;  %v641_v18 = vor.u32 %v692_v17, %v640_v15  ;;  %v823_v19 = vld [vmem:[#allocation2 + $0x28] sm:$0xff]  ;;  %v636_v20 = vld [vmem:[%s980_s2 + $0x50] sm:$0xf]  ;;  %v691_v21 = vld [vmem:[%s980_s2 + $0x54] sm:$0xf0] }
   0xc   :  { %v637_v22 = vor.u32 %v691_v21, %v636_v20  ;;  %v632_v23 = vld [vmem:[%s980_s2 + $0x40] sm:$0xf]  ;;  %v690_v24 = vld [vmem:[%s980_s2 + $0x44] sm:$0xf0]  ;;  %v628_v26 = vld [vmem:[%s980_s2 + $0x30] sm:$0xf] }
   0xd   :  { %301 = vmatpush.bf16.msra.mxu1 %v645_v16  ;;  %v633_v25 = vor.u32 %v690_v24, %v632_v23  ;;  %v689_v27 = vld [vmem:[%s980_s2 + $0x34] sm:$0xf0]  ;;  %v624_v29 = vld [vmem:[%s980_s2 + $0x20] sm:$0xf]  ;;  %v688_v30 = vld [vmem:[%s980_s2 + $0x24] sm:$0xf0] }
   0xe   :  { %197 = vmatpush.bf16.msra.mxu0 %v707_v2  ;;  %v629_v28 = vor.u32 %v689_v27, %v628_v26  ;;  %v625_v31 = vor.u32 %v688_v30, %v624_v29  ;;  %v850_v32 = vld [vmem:[#allocation2 + $0x30] sm:$0xff]  ;;  %v687_v34 = vld [vmem:[%s980_s2 + $0x14] sm:$0xf0]  ;;  %v616_v36 = vld [vmem:[%s980_s2] sm:$0xf] }
   0xf   :  { %v620_v33 = vld [vmem:[%s980_s2 + $0x10] sm:$0xf]  ;;  %v686_v37 = vld [vmem:[%s980_s2 + $0x4] sm:$0xf0]  ;;  %v865_v39 = vld [vmem:[#allocation2 + $0x38] sm:$0xff] }
  0x10   :  { %v621_v35 = vor.u32 %v687_v34, %v620_v33  ;;  %v617_v38 = vor.u32 %v686_v37, %v616_v36  ;;  %v676_v56 = vld [vmem:[%s980_s2 + $0x74] sm:$0xf]  ;;  %v701_v57 = vld [vmem:[%s980_s2 + $0x78] sm:$0xf0]  ;;  %v672_v61 = vld [vmem:[%s980_s2 + $0x64] sm:$0xf] }
  0x11   :  { %302 = vmatpush.bf16.msra.mxu1 %v641_v18  ;;  %v677_v58 = vor.u32 %v701_v57, %v676_v56  ;;  %v700_v62 = vld [vmem:[%s980_s2 + $0x68] sm:$0xf0]  ;;  %v668_v0 = vld [vmem:[%s980_s2 + $0x54] sm:$0xf]  ;;  %v699_v1 = vld [vmem:[%s980_s2 + $0x58] sm:$0xf0] }
  0x12   :  { %198 = vmatpush.bf16.msra.mxu0 %v706_v3  ;;  %v673_v63 = vor.u32 %v700_v62, %v672_v61  ;;  %v669_v2 = vor.u32 %v699_v1, %v668_v0  ;;  %v664_v3 = vld [vmem:[%s980_s2 + $0x44] sm:$0xf]  ;;  %v697_v13 = vld [vmem:[%s980_s2 + $0x38] sm:$0xf0]  ;;  %v696_v18 = vld [vmem:[%s980_s2 + $0x28] sm:$0xf0] }
  0x13   :  { %422 = vmatpush.bf16.msra.mxu2 %v677_v58  ;;  %v656_v17 = vld [vmem:[%s980_s2 + $0x24] sm:$0xf]  ;;  %v652_v21 = vld [vmem:[%s980_s2 + $0x14] sm:$0xf]  ;;  %v694_v26 = vld [vmem:[%s980_s2 + $0x8] sm:$0xf0] }
  0x14   :  { %v657_v20 = vor.u32 %v696_v18, %v656_v17 }
  0x15   :  { %303 = vmatpush.bf16.msra.mxu1 %v637_v22  ;;  %v695_v22 = vld [vmem:[%s980_s2 + $0x18] sm:$0xf0] }
  0x16   :  { %199 = vmatpush.bf16.msra.mxu0 %v705_v4  ;;  %v698_v4 = vld [vmem:[%s980_s2 + $0x48] sm:$0xf0]  ;;  %v653_v23 = vor.u32 %v695_v22, %v652_v21 }
  0x17   :  { %423 = vmatpush.bf16.msra.mxu2 %v673_v63 }
  0x19   :  { %304 = vmatpush.bf16.msra.mxu1 %v633_v25  ;;  %v648_v25 = vld [vmem:[%s980_s2 + $0x4] sm:$0xf] }
  0x1a   :  { %200 = vmatpush.bf16.msra.mxu0 %v704_v5  ;;  %v649_v27 = vor.u32 %v694_v26, %v648_v25 }
  0x1b   :  { %424 = vmatpush.bf16.msra.mxu2 %v669_v2 }
  0x1d   :  { %305 = vmatpush.bf16.msra.mxu1 %v629_v28 }
  0x1e   :  { %201 = vmatpush.bf16.msra.mxu0 %v703_v6  ;;  %v665_v6 = vor.u32 %v698_v4, %v664_v3 }
  0x20   :  { %425 = vmatpush.bf16.msra.mxu2 %v665_v6 }
  0x21   :  { %306 = vmatpush.bf16.msra.mxu1 %v625_v31  ;;  %v713_v31 = vld [vmem:[%s981_s3] ss:$0 sm:$0xff] }
  0x22   :  { %202 = vmatpush.bf16.msra.mxu0 %v702_v7  ;;  %v660_v7 = vld [vmem:[%s980_s2 + $0x34] sm:$0xf] }
  0x23   :  { %v661_v14 = vor.u32 %v697_v13, %v660_v7 }
  0x25   :  { %203 = vmatmul.bf16.vlgmr.msra.gmra.mxu0 %v796_v8  ;;  %307 = vmatpush.bf16.msra.mxu1 %v621_v35 }
  0x26   :  { %426 = vmatpush.bf16.msra.mxu2 %v661_v14 }
  0x29   :  { %308 = vmatpush.bf16.msra.mxu1 %v617_v38 }
  0x2a   :  { %427 = vmatpush.bf16.msra.mxu2 %v657_v20 }
  0x2e   :  { %428 = vmatpush.bf16.msra.mxu2 %v653_v23 }
  0x32   :  { %429 = vmatpush.bf16.msra.mxu2 %v649_v27 }
  0x35   :  { %208 = vmatmul.bf16.gmra.mxu0 %v799_v9 }
  0x45   :  { %213 = vmatmul.bf16.gmra.mxu0 %v802_v10 }
  0x55   :  { %218 = vmatmul.bf16.gmra.mxu0 %v805_v11 }
  0x65   :  { %223 = vmatmul.bf16.gmra.mxu0 %v808_v12 }
  0x75   :  { %228 = vmatmul.bf16.gmra.mxu0 %v823_v19 }
  0x85   :  { %233 = vmatmul.bf16.gmra.mxu0 %v850_v32 }
  0x95   :  { %238 = vmatmul.bf16.gmra.mxu0 %v865_v39 }
  0xa2   :  { %v204_v40 = vpop.f32.mrf.mxu0 }
  0xaa   :  { %v206_v41 = vpop.f32.mrf.mxu0 }
  0xab   :  { %v244_v42 = vpack.c.bf16 %v206_v41, %v204_v40 }
  0xad   :  { %309 = vmatmul.bf16.vlgmr.msra.gmra.mxu1 %v244_v42 }
  0xb2   :  { %v209_v43 = vpop.f32.mrf.mxu0 }
  0xba   :  { %v211_v44 = vpop.f32.mrf.mxu0 }
  0xbb   :  { %v245_v45 = vpack.c.bf16 %v211_v44, %v209_v43 }
  0xbd   :  { %314 = vmatmul.bf16.gmra.mxu1 %v245_v45 }
  0xc2   :  { %v214_v46 = vpop.f32.mrf.mxu0 }
  0xca   :  { %v216_v47 = vpop.f32.mrf.mxu0 }
  0xcb   :  { %v246_v48 = vpack.c.bf16 %v216_v47, %v214_v46 }
  0xcd   :  { %319 = vmatmul.bf16.gmra.mxu1 %v246_v48 }
  0xd2   :  { %v219_v49 = vpop.f32.mrf.mxu0 }
  0xda   :  { %v221_v50 = vpop.f32.mrf.mxu0 }
  0xdb   :  { %v247_v51 = vpack.c.bf16 %v221_v50, %v219_v49 }
  0xdd   :  { %324 = vmatmul.bf16.gmra.mxu1 %v247_v51 }
  0xe2   :  { %v224_v52 = vpop.f32.mrf.mxu0 }
  0xea   :  { %v226_v53 = vpop.f32.mrf.mxu0 }
  0xeb   :  { %v248_v54 = vpack.c.bf16 %v226_v53, %v224_v52 }
  0xed   :  { %329 = vmatmul.bf16.gmra.mxu1 %v248_v54 }
  0xf2   :  { %v229_v55 = vpop.f32.mrf.mxu0 }
  0xfa   :  { %v231_v59 = vpop.f32.mrf.mxu0 }
  0xfb   :  { %v249_v60 = vpack.c.bf16 %v231_v59, %v229_v55 }
  0xfd   :  { %334 = vmatmul.bf16.gmra.mxu1 %v249_v60 }
 0x102   :  { %v234_v5 = vpop.f32.mrf.mxu0 }
 0x10a   :  { %v236_v15 = vpop.f32.mrf.mxu0 }
 0x10b   :  { %v250_v16 = vpack.c.bf16 %v236_v15, %v234_v5 }
 0x10d   :  { %339 = vmatmul.bf16.gmra.mxu1 %v250_v16 }
 0x112   :  { %v239_v24 = vpop.f32.mrf.mxu0 }
 0x11a   :  { %v241_v28 = vpop.f32.mrf.mxu0 }
 0x11b   :  { %v251_v29 = vpack.c.bf16 %v241_v28, %v239_v24 }
 0x11d   :  { %344 = vmatmul.bf16.gmra.mxu1 %v251_v29 }
 0x12a   :  { %v310_v30 = vpop.f32.mrf.mxu1 }
 0x12b   :  { %v311_v33 = vadd.f32 %v713_v31, %v310_v30 }
 0x12d   :  { %v350_v36 = vmax.f32 %v311_v33, 0.0 }
 0x132   :  { %v312_v34 = vpop.f32.mrf.mxu1 }
 0x133   :  { %v313_v35 = vadd.f32 %v713_v31, %v312_v34 }
 0x135   :  { %v351_v37 = vmax.f32 %v313_v35, 0.0 }
 0x137   :  { %v366_v38 = vpack.c.bf16 %v351_v37, %v350_v36 }
 0x139   :  { %430 = vmatmul.bf16.vlgmr.msra.gmra.mxu2 %v366_v38 }
 0x13a   :  { %v315_v40 = vpop.f32.mrf.mxu1 }
 0x13b   :  { %v316_v41 = vadd.f32 %v713_v31, %v315_v40 }
 0x13d   :  { %v352_v44 = vmax.f32 %v316_v41, 0.0 }
 0x142   :  { %v317_v42 = vpop.f32.mrf.mxu1 }
 0x143   :  { %v318_v43 = vadd.f32 %v713_v31, %v317_v42 }
 0x145   :  { %v353_v45 = vmax.f32 %v318_v43, 0.0 }
 0x147   :  { %v367_v46 = vpack.c.bf16 %v353_v45, %v352_v44 }
 0x149   :  { %435 = vmatmul.bf16.gmra.mxu2 %v367_v46 }
 0x14a   :  { %v320_v47 = vpop.f32.mrf.mxu1 }
 0x14b   :  { %v321_v48 = vadd.f32 %v713_v31, %v320_v47 }
 0x14d   :  { %v354_v51 = vmax.f32 %v321_v48, 0.0 }
 0x152   :  { %v322_v49 = vpop.f32.mrf.mxu1 }
 0x153   :  { %v323_v50 = vadd.f32 %v713_v31, %v322_v49 }
 0x155   :  { %v355_v52 = vmax.f32 %v323_v50, 0.0 }
 0x157   :  { %v368_v53 = vpack.c.bf16 %v355_v52, %v354_v51 }
 0x159   :  { %440 = vmatmul.bf16.gmra.mxu2 %v368_v53 }
 0x15a   :  { %v325_v54 = vpop.f32.mrf.mxu1 }
 0x15b   :  { %v326_v55 = vadd.f32 %v713_v31, %v325_v54 }
 0x15d   :  { %v356_v58 = vmax.f32 %v326_v55, 0.0 }
 0x162   :  { %v327_v56 = vpop.f32.mrf.mxu1 }
 0x163   :  { %v328_v57 = vadd.f32 %v713_v31, %v327_v56 }
 0x165   :  { %v357_v59 = vmax.f32 %v328_v57, 0.0  ;;  %v714_v57 = vld [vmem:[%s981_s3 + $0x1] ss:$0 sm:$0xff] }
 0x167   :  { %v369_v60 = vpack.c.bf16 %v357_v59, %v356_v58 }
 0x169   :  { %445 = vmatmul.bf16.gmra.mxu2 %v369_v60 }
 0x16a   :  { %v330_v61 = vpop.f32.mrf.mxu1 }
 0x16b   :  { %v331_v62 = vadd.f32 %v713_v31, %v330_v61 }
 0x16d   :  { %v358_v1 = vmax.f32 %v331_v62, 0.0 }
 0x172   :  { %v332_v63 = vpop.f32.mrf.mxu1 }
 0x173   :  { %v333_v0 = vadd.f32 %v713_v31, %v332_v63 }
 0x175   :  { %v359_v2 = vmax.f32 %v333_v0, 0.0 }
 0x177   :  { %v370_v3 = vpack.c.bf16 %v359_v2, %v358_v1 }
 0x179   :  { %450 = vmatmul.bf16.gmra.mxu2 %v370_v3 }
 0x17a   :  { %v335_v4 = vpop.f32.mrf.mxu1 }
 0x17b   :  { %v336_v5 = vadd.f32 %v713_v31, %v335_v4 }
 0x17d   :  { %v360_v13 = vmax.f32 %v336_v5, 0.0 }
 0x182   :  { %v337_v6 = vpop.f32.mrf.mxu1 }
 0x183   :  { %v338_v7 = vadd.f32 %v713_v31, %v337_v6 }
 0x185   :  { %v361_v14 = vmax.f32 %v338_v7, 0.0 }
 0x187   :  { %v371_v15 = vpack.c.bf16 %v361_v14, %v360_v13 }
 0x189   :  { %455 = vmatmul.bf16.gmra.mxu2 %v371_v15 }
 0x18a   :  { %v340_v16 = vpop.f32.mrf.mxu1 }
 0x18b   :  { %v341_v17 = vadd.f32 %v713_v31, %v340_v16 }
 0x18d   :  { %v362_v21 = vmax.f32 %v341_v17, 0.0 }
 0x192   :  { %v342_v18 = vpop.f32.mrf.mxu1 }
 0x193   :  { %v343_v20 = vadd.f32 %v713_v31, %v342_v18 }
 0x195   :  { %v363_v22 = vmax.f32 %v343_v20, 0.0 }
 0x197   :  { %v372_v23 = vpack.c.bf16 %v363_v22, %v362_v21 }
 0x199   :  { %460 = vmatmul.bf16.gmra.mxu2 %v372_v23 }
 0x19a   :  { %v345_v24 = vpop.f32.mrf.mxu1 }
 0x19b   :  { %v346_v25 = vadd.f32 %v713_v31, %v345_v24 }
 0x19d   :  { %v364_v28 = vmax.f32 %v346_v25, 0.0 }
 0x1a2   :  { %v347_v26 = vpop.f32.mrf.mxu1 }
 0x1a3   :  { %v348_v27 = vadd.f32 %v713_v31, %v347_v26 }
 0x1a5   :  { %v365_v29 = vmax.f32 %v348_v27, 0.0 }
 0x1a7   :  { %v373_v30 = vpack.c.bf16 %v365_v29, %v364_v28 }
 0x1a9   :  { %465 = vmatmul.bf16.gmra.mxu2 %v373_v30 }
 0x1bc   :  { %v431_v33 = vpop.f32.mrf.mxu2 }
 0x1c4   :  { %v433_v34 = vpop.f32.mrf.mxu2 }
 0x1c5   :  { %v471_v35 = vpack.c.bf16 %v433_v34, %v431_v33 }
 0x1cc   :  { %v436_v36 = vpop.f32.mrf.mxu2 }
 0x1d4   :  { %v438_v37 = vpop.f32.mrf.mxu2 }
 0x1d5   :  { %v472_v38 = vpack.c.bf16 %v438_v37, %v436_v36 }
 0x1dc   :  { %v441_v40 = vpop.f32.mrf.mxu2 }
 0x1e4   :  { %v443_v41 = vpop.f32.mrf.mxu2 }
 0x1e5   :  { %v473_v42 = vpack.c.bf16 %v443_v41, %v441_v40 }
 0x1ec   :  { %v446_v43 = vpop.f32.mrf.mxu2 }
 0x1f4   :  { %v448_v44 = vpop.f32.mrf.mxu2 }
 0x1f5   :  { %v474_v45 = vpack.c.bf16 %v448_v44, %v446_v43 }
 0x1fc   :  { %v451_v46 = vpop.f32.mrf.mxu2 }
 0x204   :  { %v453_v47 = vpop.f32.mrf.mxu2 }
 0x205   :  { %v475_v56 = vpack.c.bf16 %v453_v47, %v451_v46 }
 0x20c   :  { %v456_v48 = vpop.f32.mrf.mxu2 }
 0x214   :  { %v458_v31 = vpop.f32.mrf.mxu2 }
 0x215   :  { %v476_v55 = vpack.c.bf16 %v458_v31, %v456_v48 }
 0x21c   :  { %v461_v49 = vpop.f32.mrf.mxu2 }
 0x224   :  { %v463_v50 = vpop.f32.mrf.mxu2 }
 0x225   :  { %v477_v54 = vpack.c.bf16 %v463_v50, %v461_v49 }
 0x22c   :  { %v466_v51 = vpop.f32.mrf.mxu2 }
 0x234   :  { %v468_v52 = vpop.f32.mrf.mxu2 }
 0x235   :  { %v478_v53 = vpack.c.bf16 %v468_v52, %v466_v51 }
 0x237   :  { %480 = vmatpush.bf16.msra.mxu3 %v478_v53 }
 0x23b   :  { %481 = vmatpush.bf16.msra.mxu3 %v477_v54 }
 0x23f   :  { %482 = vmatpush.bf16.msra.mxu3 %v476_v55 }
 0x243   :  { %483 = vmatpush.bf16.msra.mxu3 %v475_v56 }
 0x247   :  { %484 = vmatpush.bf16.msra.mxu3 %v474_v45 }
 0x24b   :  { %485 = vmatpush.bf16.msra.mxu3 %v473_v42 }
 0x24f   :  { %486 = vmatpush.bf16.msra.mxu3 %v472_v38 }
 0x253   :  { %487 = vmatpush.bf16.msra.mxu3 %v471_v35 }
 0x256   :  { %488 = vmatmul.bf16.vlgmr.msra.gmra.mxu3 %v796_v8 }
 0x266   :  { %493 = vmatmul.bf16.gmra.mxu3 %v799_v9 }
 0x276   :  { %498 = vmatmul.bf16.gmra.mxu3 %v802_v10 }
 0x286   :  { %503 = vmatmul.bf16.gmra.mxu3 %v805_v11 }
 0x296   :  { %508 = vmatmul.bf16.gmra.mxu3 %v808_v12 }
 0x2a6   :  { %513 = vmatmul.bf16.gmra.mxu3 %v823_v19 }
 0x2b6   :  { %518 = vmatmul.bf16.gmra.mxu3 %v850_v32 }
 0x2c6   :  { %523 = vmatmul.bf16.gmra.mxu3 %v865_v39 }
 0x2d9   :  { %v489_v58 = vpop.f32.mrf.mxu3 }
 0x2da   :  { %v490_v8 = vadd.f32 %v714_v57, %v489_v58 }
 0x2dc   :  { %529 = vst [vmem:[%s982_s4] sm:$0xff] %v490_v8 }
 0x2e1   :  { %v491_v9 = vpop.f32.mrf.mxu3 }
 0x2e2   :  { %v492_v10 = vadd.f32 %v714_v57, %v491_v9 }
 0x2e4   :  { %530 = vst [vmem:[%s982_s4 + $0x8] sm:$0xff] %v492_v10 }
 0x2e9   :  { %v494_v11 = vpop.f32.mrf.mxu3 }
 0x2ea   :  { %v495_v12 = vadd.f32 %v714_v57, %v494_v11 }
 0x2ec   :  { %531 = vst [vmem:[%s982_s4 + $0x10] sm:$0xff] %v495_v12 }
 0x2f1   :  { %v496_v19 = vpop.f32.mrf.mxu3 }
 0x2f2   :  { %v497_v32 = vadd.f32 %v714_v57, %v496_v19 }
 0x2f4   :  { %532 = vst [vmem:[%s982_s4 + $0x18] sm:$0xff] %v497_v32 }
 0x2f9   :  { %v499_v39 = vpop.f32.mrf.mxu3 }
 0x2fa   :  { %v500_v59 = vadd.f32 %v714_v57, %v499_v39 }
 0x2fc   :  { %533 = vst [vmem:[%s982_s4 + $0x20] sm:$0xff] %v500_v59 }
 0x301   :  { %v501_v60 = vpop.f32.mrf.mxu3 }
 0x302   :  { %v502_v61 = vadd.f32 %v714_v57, %v501_v60 }
 0x304   :  { %534 = vst [vmem:[%s982_s4 + $0x28] sm:$0xff] %v502_v61 }
 0x309   :  { %v504_v62 = vpop.f32.mrf.mxu3 }
 0x30a   :  { %v505_v63 = vadd.f32 %v714_v57, %v504_v62 }
 0x30c   :  { %535 = vst [vmem:[%s982_s4 + $0x30] sm:$0xff] %v505_v63 }
 0x311   :  { %v506_v0 = vpop.f32.mrf.mxu3 }
 0x312   :  { %v507_v1 = vadd.f32 %v714_v57, %v506_v0 }
 0x314   :  { %536 = vst [vmem:[%s982_s4 + $0x38] sm:$0xff] %v507_v1 }
 0x319   :  { %v509_v2 = vpop.f32.mrf.mxu3 }
 0x31a   :  { %v510_v3 = vadd.f32 %v714_v57, %v509_v2 }
 0x31c   :  { %537 = vst [vmem:[%s982_s4 + $0x40] sm:$0xff] %v510_v3 }
 0x321   :  { %v511_v4 = vpop.f32.mrf.mxu3 }
 0x322   :  { %v512_v5 = vadd.f32 %v714_v57, %v511_v4 }
 0x324   :  { %538 = vst [vmem:[%s982_s4 + $0x48] sm:$0xff] %v512_v5 }
 0x329   :  { %v514_v6 = vpop.f32.mrf.mxu3 }
 0x32a   :  { %v515_v7 = vadd.f32 %v714_v57, %v514_v6 }
 0x32c   :  { %539 = vst [vmem:[%s982_s4 + $0x50] sm:$0xff] %v515_v7 }
 0x331   :  { %v516_v13 = vpop.f32.mrf.mxu3 }
 0x332   :  { %v517_v14 = vadd.f32 %v714_v57, %v516_v13 }
 0x334   :  { %540 = vst [vmem:[%s982_s4 + $0x58] sm:$0xff] %v517_v14 }
 0x339   :  { %v519_v15 = vpop.f32.mrf.mxu3 }
 0x33a   :  { %v520_v16 = vadd.f32 %v714_v57, %v519_v15 }
 0x33c   :  { %541 = vst [vmem:[%s982_s4 + $0x60] sm:$0xff] %v520_v16 }
 0x341   :  { %v521_v17 = vpop.f32.mrf.mxu3 }
 0x342   :  { %v522_v18 = vadd.f32 %v714_v57, %v521_v17 }
 0x344   :  { %542 = vst [vmem:[%s982_s4 + $0x68] sm:$0xff] %v522_v18 }
 0x349   :  { %v524_v20 = vpop.f32.mrf.mxu3 }
 0x34a   :  { %v525_v21 = vadd.f32 %v714_v57, %v524_v20 }
 0x34c   :  { %543 = vst [vmem:[%s982_s4 + $0x70] sm:$0xff] %v525_v21 }
 0x351   :  { %v526_v22 = vpop.f32.mrf.mxu3 }
 0x352   :  { %v527_v23 = vadd.f32 %v714_v57, %v526_v22 }
 0x354   :  { %544 = vst [vmem:[%s982_s4 + $0x78] sm:$0xff] %v527_v23 }
 0x355   :  { %549 = vsyncpa [#allocation3], 1 }

</bundles_post_ra>
